<compile_context>
chip_gen: v7x
topology: tpu7x:2x2x1
jax: 0.10.0
libtpu: 0.0.40
codegen_flags: <defaults>
</compile_context>

<pallas_src>
import functools

import jax
import jax.numpy as jnp
from jax import lax
from jax.experimental import pallas as pl
from jax.experimental.pallas import tpu as pltpu


def _round_up(n, m):
    return ((n + m - 1) // m) * m


def _mlp_kernel(x_ref,
                w1_ref, b1_ref,
                w2_ref, b2_ref,
                w3_ref, b3_ref,
                w45t_ref, b45_ref,
                o_ref):
    """Fused Encoder (3x Linear+ReLU) + folded Linear4@Head, transposed output.

    Matmul operands bf16, accumulation f32, bias/ReLU f32.
    Output block is [classes_pad, bm] (lane dim = batch tile, dense stores).
    """
    x = x_ref[...].astype(jnp.bfloat16)                          # in-kernel cast
    h = jnp.dot(x, w1_ref[...], preferred_element_type=jnp.float32) + b1_ref[...]
    h = jnp.maximum(h, 0.0)
    h = jnp.dot(h.astype(jnp.bfloat16), w2_ref[...],
                preferred_element_type=jnp.float32) + b2_ref[...]
    h = jnp.maximum(h, 0.0)
    h = jnp.dot(h.astype(jnp.bfloat16), w3_ref[...],
                preferred_element_type=jnp.float32) + b3_ref[...]
    h = jnp.maximum(h, 0.0)                                      # [bm, 12] f32
    # Transposed final matmul: [classes_pad, 12] x [bm, 12] (contract on 12)
    # -> [classes_pad, bm].  Bias is a [classes_pad, 1] column (lane-broadcast).
    out_t = lax.dot_general(
        w45t_ref[...], h.astype(jnp.bfloat16),
        dimension_numbers=(((1,), (1,)), ((), ())),
        preferred_element_type=jnp.float32) + b45_ref[...]
    o_ref[...] = out_t


def prepare_params(params):
    """One-time parameter prep (fold layer4+head, pad, transpose, cast).

    Run once at load time; the outputs are what classifier_forward consumes.
    """
    (w1, b1), (w2, b2), (w3, b3), (w4, b4), (w5, b5) = (
        params["l1"], params["l2"], params["l3"], params["l4"], params["head"])
    classes = w5.shape[1]
    classes_pad = max(8, _round_up(classes, 8))                  # sublane pad only

    # Fold Linear(12, lat) and Head Linear(lat, classes): no activation between
    # them, so mathematically identical to one (12 -> classes) matmul.
    w45 = w4.astype(jnp.float32) @ w5.astype(jnp.float32)        # [12, classes]
    b45 = b4.astype(jnp.float32) @ w5.astype(jnp.float32) + b5.astype(jnp.float32)

    # Transposed, sublane-padded weight for the [classes_pad, bm] output layout.
    w45t = (jnp.zeros((classes_pad, w45.shape[0]), jnp.float32)
            .at[:classes, :].set(w45.T).astype(jnp.bfloat16))    # [classes_pad, 12]
    b45c = (jnp.zeros((classes_pad, 1), jnp.float32)
            .at[:classes, 0].set(b45))                           # [classes_pad, 1]

    w1b, w2b, w3b = (w.astype(jnp.bfloat16) for w in (w1, w2, w3))
    b1r, b2r, b3r = (b.astype(jnp.float32).reshape(1, -1) for b in (b1, b2, b3))
    return (w1b, b1r, w2b, b2r, w3b, b3r, w45t, b45c)


def _pick_block(B, block_b):
    """Batch tile: multiple of 128 (output lane dim), large, >=2 steps when big."""
    bm = max(128, min(_round_up(block_b, 128), 4096))
    if B > 512:
        # v7x has 2 TensorCores: guarantee at least 2 grid steps.
        bm = min(bm, _round_up(pl.cdiv(B, 2), 256))
    if bm >= B:
        bm = B          # single full-batch tile (block == full dim is always legal)
    return bm


@functools.partial(jax.jit, static_argnames=("classes", "block_b",
                                              "return_transposed"))
def classifier_forward(x, prep, *, classes, block_b=1024, return_transposed=False):
    """x: [B, img_size] float32; prep: output of prepare_params()."""
    B, img_size = x.shape
    w1b, b1r, w2b, b2r, w3b, b3r, w45t, b45c = prep
    classes_pad = w45t.shape[0]

    bm = _pick_block(B, block_b)
    grid = (pl.cdiv(B, bm),)

    wmap = lambda i: (0, 0)
    full = lambda a: pl.BlockSpec(a.shape, wmap)

    flops = 2 * B * (img_size * 128 + 128 * 64 + 64 * 12 + 12 * classes_pad)
    bytes_accessed = (B * img_size * 4 + B * classes_pad * 4
                      + 2 * (img_size * 128 + 128 * 64 + 64 * 12
                             + classes_pad * 12)
                      + 4 * (128 + 64 + 12 + classes_pad))

    out_t = pl.pallas_call(
        _mlp_kernel,
        out_shape=jax.ShapeDtypeStruct((classes_pad, B), jnp.float32),
        grid_spec=pltpu.PrefetchScalarGridSpec(
            num_scalar_prefetch=0,
            grid=grid,
            in_specs=[
                pl.BlockSpec((bm, img_size), lambda i: (i, 0)),   # x (f32, cast in-kernel)
                full(w1b), full(b1r),
                full(w2b), full(b2r),
                full(w3b), full(b3r),
                full(w45t), full(b45c),
            ],
            out_specs=pl.BlockSpec((classes_pad, bm), lambda i: (0, i)),
        ),
        compiler_params=pltpu.CompilerParams(
            dimension_semantics=("parallel",)),
        cost_estimate=pl.CostEstimate(flops=flops, transcendentals=0,
                                      bytes_accessed=bytes_accessed),
    )(x, w1b, b1r, w2b, b2r, w3b, b3r, w45t, b45c)

    if return_transposed:
        # Preferred for fused consumers (argmax/softmax/loss): tiny padded slab
        # [classes_pad, B]; rows >= classes are zero-weight padding.
        return out_t
    # Module-semantics layout [B, classes]. The slab is only 4*classes_pad B/row,
    # so this transpose/slice pass is ~8x cheaper than the old padded layout.
    return out_t[:classes, :].T


def init_params(key, img_size, lat_size, classes):
    """Deterministic init mimicking torch.nn.Linear default (U[-1/sqrt(fan_in), +])."""
    dims = [(img_size, 128), (128, 64), (64, 12), (12, lat_size), (lat_size, classes)]
    names = ["l1", "l2", "l3", "l4", "head"]
    params = {}
    for name, (fan_in, fan_out) in zip(names, dims):
        key, kw, kb = jax.random.split(key, 3)
        bound = 1.0 / jnp.sqrt(fan_in)
        w = jax.random.uniform(kw, (fan_in, fan_out), jnp.float32, -bound, bound)
        b = jax.random.uniform(kb, (fan_out,), jnp.float32, -bound, bound)
        params[name] = (w, b)
    return params


def reference_forward(x, params):
    """Plain-JAX f32 reference of Classifier.forward for validation."""
    (w1, b1), (w2, b2), (w3, b3), (w4, b4), (w5, b5) = (
        params["l1"], params["l2"], params["l3"], params["l4"], params["head"])
    h = jnp.maximum(x @ w1 + b1, 0.0)
    h = jnp.maximum(h @ w2 + b2, 0.0)
    h = jnp.maximum(h @ w3 + b3, 0.0)
    z = h @ w4 + b4
    return z @ w5 + b5


if __name__ == "__main__":
    # Shapes consistent with the module: x is a flattened image batch.
    # batch = 2 * block tile so the grid has 2 steps (multi-step / megacore path).
    batch, img_size, lat_size, classes = 256, 64, 16, 10
    block_b = 128

    key = jax.random.PRNGKey(0)
    kx, kp = jax.random.split(key)
    x = jax.random.normal(kx, (batch, img_size), jnp.float32)
    params = init_params(kp, img_size, lat_size, classes)

    prep = prepare_params(params)                       # one-time, off the hot path
    out = classifier_forward(x, prep, classes=classes, block_b=block_b)
    out = jax.block_until_ready(out)

    ref = reference_forward(x, params)
    assert out.shape == (batch, classes), out.shape
    # bf16 matmul operands (+ host-side W4@W5 fold) vs pure-f32 reference:
    # tolerances loosened accordingly.
    assert jnp.allclose(out, ref, atol=5e-2, rtol=5e-2), float(jnp.max(jnp.abs(out - ref)))

    # TODO(synk): loss (MSE/CE), optimizer (Adam/SGD) and torch.load of
    # 'enc_trained.pth' in __init__ are training/IO machinery, not part of
    # forward(); not implemented here.
    print("KERNEL_OK")
</pallas_src>

<mosaic_0001>
module attributes {stable_mosaic.version = 11 : i64} {
  func.func @_mlp_kernel(%arg0: i32, %arg1: memref<128x64xf32, #tpu.memory_space<vmem>>, %arg2: memref<64x128xbf16, #tpu.memory_space<vmem>>, %arg3: memref<1x128xf32, #tpu.memory_space<vmem>>, %arg4: memref<128x64xbf16, #tpu.memory_space<vmem>>, %arg5: memref<1x64xf32, #tpu.memory_space<vmem>>, %arg6: memref<64x12xbf16, #tpu.memory_space<vmem>>, %arg7: memref<1x12xf32, #tpu.memory_space<vmem>>, %arg8: memref<16x12xbf16, #tpu.memory_space<vmem>>, %arg9: memref<16x1xf32, #tpu.memory_space<vmem>>, %arg10: memref<16x128xf32, #tpu.memory_space<vmem>>) attributes {dimension_semantics = [#tpu.dimension_semantics<parallel>], iteration_bounds = array<i64: 2>, scalar_prefetch = 0 : i64, scratch_operands = 0 : i64, tpu.core_type = #tpu.core_type<tc>, window_params = [{transform_indices = @transform_0, window_bounds = array<i64: 128, 64>}, {pipeline_mode = #tpu.pipeline_mode<synchronous>, transform_indices = @transform_1, window_bounds = array<i64: 64, 128>}, {pipeline_mode = #tpu.pipeline_mode<synchronous>, transform_indices = @transform_2, window_bounds = array<i64: 1, 128>}, {pipeline_mode = #tpu.pipeline_mode<synchronous>, transform_indices = @transform_3, window_bounds = array<i64: 128, 64>}, {pipeline_mode = #tpu.pipeline_mode<synchronous>, transform_indices = @transform_4, window_bounds = array<i64: 1, 64>}, {pipeline_mode = #tpu.pipeline_mode<synchronous>, transform_indices = @transform_5, window_bounds = array<i64: 64, 12>}, {pipeline_mode = #tpu.pipeline_mode<synchronous>, transform_indices = @transform_6, window_bounds = array<i64: 1, 12>}, {pipeline_mode = #tpu.pipeline_mode<synchronous>, transform_indices = @transform_7, window_bounds = array<i64: 16, 12>}, {pipeline_mode = #tpu.pipeline_mode<synchronous>, transform_indices = @transform_8, window_bounds = array<i64: 16, 1>}, {transform_indices = @transform_9, window_bounds = array<i64: 16, 128>}]} {
    %c0 = arith.constant 0 : index
    %c0_0 = arith.constant 0 : index
    %0 = vector.load %arg1[%c0, %c0_0] : memref<128x64xf32, #tpu.memory_space<vmem>>, vector<128x64xf32>
    %1 = arith.truncf %0 : vector<128x64xf32> to vector<128x64xbf16>
    %c0_1 = arith.constant 0 : index
    %c0_2 = arith.constant 0 : index
    %2 = vector.load %arg2[%c0_1, %c0_2] : memref<64x128xbf16, #tpu.memory_space<vmem>>, vector<64x128xbf16>
    %cst = arith.constant dense<0.000000e+00> : vector<128x128xf32>
    %3 = tpu.matmul %1, %2, %cst {dimension_numbers = #tpu.dot_dimension_numbers<[1], [0], [0], [1], [0, 0, 1, 1], [], []>} : vector<128x64xbf16>, vector<64x128xbf16>, vector<128x128xf32> -> vector<128x128xf32>
    %c0_3 = arith.constant 0 : index
    %c0_4 = arith.constant 0 : index
    %4 = vector.load %arg3[%c0_3, %c0_4] : memref<1x128xf32, #tpu.memory_space<vmem>>, vector<1x128xf32>
    %5 = vector.broadcast %4 : vector<1x128xf32> to vector<128x128xf32>
    %6 = arith.addf %3, %5 : vector<128x128xf32>
    %cst_5 = arith.constant 0.000000e+00 : f32
    %7 = vector.broadcast %cst_5 : f32 to vector<128x128xf32>
    %8 = arith.maximumf %6, %7 : vector<128x128xf32>
    %9 = arith.truncf %8 : vector<128x128xf32> to vector<128x128xbf16>
    %c0_6 = arith.constant 0 : index
    %c0_7 = arith.constant 0 : index
    %10 = vector.load %arg4[%c0_6, %c0_7] : memref<128x64xbf16, #tpu.memory_space<vmem>>, vector<128x64xbf16>
    %cst_8 = arith.constant dense<0.000000e+00> : vector<128x64xf32>
    %11 = tpu.matmul %9, %10, %cst_8 {dimension_numbers = #tpu.dot_dimension_numbers<[1], [0], [0], [1], [0, 0, 1, 1], [], []>} : vector<128x128xbf16>, vector<128x64xbf16>, vector<128x64xf32> -> vector<128x64xf32>
    %c0_9 = arith.constant 0 : index
    %c0_10 = arith.constant 0 : index
    %12 = vector.load %arg5[%c0_9, %c0_10] : memref<1x64xf32, #tpu.memory_space<vmem>>, vector<1x64xf32>
    %13 = vector.broadcast %12 : vector<1x64xf32> to vector<128x64xf32>
    %14 = arith.addf %11, %13 : vector<128x64xf32>
    %cst_11 = arith.constant 0.000000e+00 : f32
    %15 = vector.broadcast %cst_11 : f32 to vector<128x64xf32>
    %16 = arith.maximumf %14, %15 : vector<128x64xf32>
    %17 = arith.truncf %16 : vector<128x64xf32> to vector<128x64xbf16>
    %c0_12 = arith.constant 0 : index
    %c0_13 = arith.constant 0 : index
    %18 = vector.load %arg6[%c0_12, %c0_13] : memref<64x12xbf16, #tpu.memory_space<vmem>>, vector<64x12xbf16>
    %cst_14 = arith.constant dense<0.000000e+00> : vector<128x12xf32>
    %19 = tpu.matmul %17, %18, %cst_14 {dimension_numbers = #tpu.dot_dimension_numbers<[1], [0], [0], [1], [0, 0, 1, 1], [], []>} : vector<128x64xbf16>, vector<64x12xbf16>, vector<128x12xf32> -> vector<128x12xf32>
    %c0_15 = arith.constant 0 : index
    %c0_16 = arith.constant 0 : index
    %20 = vector.load %arg7[%c0_15, %c0_16] : memref<1x12xf32, #tpu.memory_space<vmem>>, vector<1x12xf32>
    %21 = vector.broadcast %20 : vector<1x12xf32> to vector<128x12xf32>
    %22 = arith.addf %19, %21 : vector<128x12xf32>
    %cst_17 = arith.constant 0.000000e+00 : f32
    %23 = vector.broadcast %cst_17 : f32 to vector<128x12xf32>
    %24 = arith.maximumf %22, %23 : vector<128x12xf32>
    %c0_18 = arith.constant 0 : index
    %c0_19 = arith.constant 0 : index
    %25 = vector.load %arg8[%c0_18, %c0_19] : memref<16x12xbf16, #tpu.memory_space<vmem>>, vector<16x12xbf16>
    %26 = arith.truncf %24 : vector<128x12xf32> to vector<128x12xbf16>
    %cst_20 = arith.constant dense<0.000000e+00> : vector<16x128xf32>
    %27 = tpu.matmul %25, %26, %cst_20 {dimension_numbers = #tpu.dot_dimension_numbers<[1], [1], [0], [0], [0, 0, 1, 0], [], []>} : vector<16x12xbf16>, vector<128x12xbf16>, vector<16x128xf32> -> vector<16x128xf32>
    %c0_21 = arith.constant 0 : index
    %c0_22 = arith.constant 0 : index
    %28 = vector.load %arg9[%c0_21, %c0_22] : memref<16x1xf32, #tpu.memory_space<vmem>>, vector<16x1xf32>
    %29 = vector.broadcast %28 : vector<16x1xf32> to vector<16x128xf32>
    %30 = arith.addf %27, %29 : vector<16x128xf32>
    %c0_23 = arith.constant 0 : index
    %c0_24 = arith.constant 0 : index
    %31 = vector.load %arg10[%c0_23, %c0_24] : memref<16x128xf32, #tpu.memory_space<vmem>>, vector<16x128xf32>
    tpu.vector_store %arg10[%c0_23, %c0_24], %30 {strides = array<i32>} : memref<16x128xf32, #tpu.memory_space<vmem>>, vector<16x128xf32>,
    return
  }
  func.func @transform_0(%arg0: i32) -> (i32, i32) {
    %c0_i32 = arith.constant 0 : i32
    %c0_i32_0 = arith.constant 0 : i32
    return %arg0, %c0_i32 : i32, i32
  }
  func.func @transform_1(%arg0: i32) -> (i32, i32) {
    %c0_i32 = arith.constant 0 : i32
    %c0_i32_0 = arith.constant 0 : i32
    %c0_i32_1 = arith.constant 0 : i32
    return %c0_i32, %c0_i32_0 : i32, i32
  }
  func.func @transform_2(%arg0: i32) -> (i32, i32) {
    %c0_i32 = arith.constant 0 : i32
    %c0_i32_0 = arith.constant 0 : i32
    %c0_i32_1 = arith.constant 0 : i32
    return %c0_i32, %c0_i32_0 : i32, i32
  }
  func.func @transform_3(%arg0: i32) -> (i32, i32) {
    %c0_i32 = arith.constant 0 : i32
    %c0_i32_0 = arith.constant 0 : i32
    %c0_i32_1 = arith.constant 0 : i32
    return %c0_i32, %c0_i32_0 : i32, i32
  }
  func.func @transform_4(%arg0: i32) -> (i32, i32) {
    %c0_i32 = arith.constant 0 : i32
    %c0_i32_0 = arith.constant 0 : i32
    %c0_i32_1 = arith.constant 0 : i32
    return %c0_i32, %c0_i32_0 : i32, i32
  }
  func.func @transform_5(%arg0: i32) -> (i32, i32) {
    %c0_i32 = arith.constant 0 : i32
    %c0_i32_0 = arith.constant 0 : i32
    %c0_i32_1 = arith.constant 0 : i32
    return %c0_i32, %c0_i32_0 : i32, i32
  }
  func.func @transform_6(%arg0: i32) -> (i32, i32) {
    %c0_i32 = arith.constant 0 : i32
    %c0_i32_0 = arith.constant 0 : i32
    %c0_i32_1 = arith.constant 0 : i32
    return %c0_i32, %c0_i32_0 : i32, i32
  }
  func.func @transform_7(%arg0: i32) -> (i32, i32) {
    %c0_i32 = arith.constant 0 : i32
    %c0_i32_0 = arith.constant 0 : i32
    %c0_i32_1 = arith.constant 0 : i32
    return %c0_i32, %c0_i32_0 : i32, i32
  }
  func.func @transform_8(%arg0: i32) -> (i32, i32) {
    %c0_i32 = arith.constant 0 : i32
    %c0_i32_0 = arith.constant 0 : i32
    %c0_i32_1 = arith.constant 0 : i32
    return %c0_i32, %c0_i32_0 : i32, i32
  }
  func.func @transform_9(%arg0: i32) -> (i32, i32) {
    %c0_i32 = arith.constant 0 : i32
    %c0_i32_0 = arith.constant 0 : i32
    return %c0_i32, %arg0 : i32, i32
  }
}

</mosaic_0001>

<bundles_post_ra>
// kernel: classifier_forward.1
= control target key start
LH: loop header
LB: loop body
LE: loop exit
PB: predicated region body
PF: predicated region fallthrough
CT: control target
= control target key end

     0   :  { %s1420_s30 = smov 0   ;;  %s1422_s10 = smov 0   ;;  %s1588_s0 = inlined_call_operand.vmem [shape: f32[256,64], index: 0, kind: input, shape index: {}]   ;;  %s1589_s1 = inlined_call_operand.vmem [shape: bf16[64,128], index: 1, kind: input, shape index: {}]   ;;  %s1590_s2 = inlined_call_operand.vmem [shape: f32[1,128], index: 2, kind: input, shape index: {}]   ;;  %s1591_s3 = inlined_call_operand.vmem [shape: bf16[128,64], index: 3, kind: input, shape index: {}]   ;;  %s1592_s4 = inlined_call_operand.vmem [shape: f32[1,64], index: 4, kind: input, shape index: {}]   ;;  %s1593_s5 = inlined_call_operand.vmem [shape: bf16[64,12], index: 5, kind: input, shape index: {}]   ;;  %s1594_s6 = inlined_call_operand.vmem [shape: f32[1,12], index: 6, kind: input, shape index: {}]   ;;  %s1595_s7 = inlined_call_operand.vmem [shape: bf16[16,12], index: 7, kind: input, shape index: {}]   ;;  %s1596_s8 = inlined_call_operand.vmem [shape: f32[16,1], index: 8, kind: input, shape index: {}]   ;;  %s1597_s9 = inlined_call_operand.vmem [shape: f32[16,256], index: 9, kind: output, shape index: {}]  }
   0x1   :  { %s1424_s11 = smov 0  }
   0x2 LB: > { %s1433_s12 = sadd.s32 4294967295, %s1365_s11   ;;  %s1435_s13 = sadd.s32 1, %s1365_s11   ;;  %s1365_s11 = sphi %s1424_s11, %s1601_s11   ;;  %s1361_s10 = sphi %s1422_s10, %s1600_s10   ;;  %s1357_s30 = sphi %s1420_s30, %s1599_s30  }
   0x3   : > { %s217_s14 = ssub.s32 %s1365_s11, %s1435_s13  ;;  %s220_s15 = sadd.s32 1, %s1361_s10 }
   0x4   : > { %p218_p0 = scmp.eq.s32.totalorder %s217_s14, 0  ;;  %p230_p1 = scmp.ne.s32.totalorder %s1361_s10, %s1357_s30 }
   0x5   : > { %p231_p2 = scmp.eq.s32.totalorder %s1433_s12, 1  ;;  %p1104_p3 = scmp.ge.s32.totalorder %s1365_s11, 1 }
   0x6   : > { %s1443_s16 = scalar_select %p218_p0, %s1361_s10, %s220_s15  }
   0x7   : > { %p1445_p4 = por %p231_p2, %p230_p1  ;;  %p288_p5 = scmp.lt.s32.totalorder %s1365_s11, 3 }
   0x9   : > { %p289_p6 = pnand %p1104_p3, %p288_p5 }
   0xa   : > { %v1326_v0 = vld [vmem:[%s1589_s1] sm:$0xff] (!%p289_p6)   ;;  %s1106_s20 = sshll.u32 (!%p289_p6), %s1433_s12, 4  ;;  %v1327_v1 = vld [vmem:[%s1589_s1 + $0x8] sm:$0xff] (!%p289_p6)   ;;  %v1328_v2 = vld [vmem:[%s1589_s1 + $0x10] sm:$0xff] (!%p289_p6)   ;;  %vm393_vm0 = vcmask (!%p289_p6), 523264   ;;  %vm1368_vm1 = vmmov (!%p289_p6), 0  }
   0xb   : > { %292 = sbr.rel (%p289_p6) target bundleno = 981 (0x3d5), region = 56  ;;  %p324_p7 = scmp.lt.s32.totalorder (!%p289_p6), %s1106_s20, 31  ;;  %1198 = vmatprep.subr.bf16.mxu0 (!%p289_p6), %v1326_v0  ;;  %v1330_v3 = vld [vmem:[%s1591_s3] sm:$0xff] (!%p289_p6)   ;;  %v1331_v4 = vld [vmem:[%s1591_s3 + $0x8] sm:$0xff] (!%p289_p6)   ;;  %v1329_v7 = vld [vmem:[%s1589_s1 + $0x18] sm:$0xff] (!%p289_p6)   ;;  %vm934_vm2 = vcmask (!%p289_p6), 97280  }
   0xc   : > { %1199 = vmatpush3.bf16.msra.mxu0 (!%p289_p6), %v1326_v0  ;;  %1222 = vmatprep.subr.bf16.mxu1 (!%p289_p6), %v1330_v3  ;;  %v1332_v9 = vld [vmem:[%s1591_s3 + $0x10] sm:$0xff] (!%p289_p6)   ;;  %v1333_v14 = vld [vmem:[%s1591_s3 + $0x18] sm:$0xff] (!%p289_p6)   ;;  %v1334_v17 = vld [vmem:[%s1591_s3 + $0x20] sm:$0xff] (!%p289_p6)   ;;  %s320_s22 = sand.u32 (!%p289_p6), 1, %s1357_s30  }
   0xd   : > { %1200 = vmatprep.subr.bf16.mxu0 (!%p289_p6), %v1327_v1  ;;  %1223 = vmatpush3.bf16.msra.mxu1 (!%p289_p6), %v1330_v3  ;;  %v1335_v22 = vld [vmem:[%s1591_s3 + $0x28] sm:$0xff] (!%p289_p6)   ;;  %v1336_v34 = vld [vmem:[%s1591_s3 + $0x30] sm:$0xff] (!%p289_p6)   ;;  %v1337_v35 = vld [vmem:[%s1591_s3 + $0x38] sm:$0xff] (!%p289_p6)   ;;  %s1105_s23 = sshll.u32 (!%p289_p6), %s320_s22, 4 }
   0xe   : > { %1224 = vmatprep.subr.bf16.mxu1 (!%p289_p6), %v1331_v4  ;;  %v1338_v36 = vld [vmem:[%s1593_s5] sm:$0xff] (!%p289_p6)   ;;  %v1339_v37 = vld [vmem:[%s1593_s5 + $0x8] sm:$0xff] (!%p289_p6)   ;;  %v1340_v38 = vld [vmem:[%s1593_s5 + $0x10] sm:$0xff] (!%p289_p6)   ;;  %s322_s24 = scalar_lea.vmem (!%p289_p6), [#allocation2], %s1105_s23 }
   0xf   : > { %v1108_v39 = vld [vmem:[%s1590_s2] ss:$0 sm:$0xff] (!%p289_p6) }
  0x10   : > { %1201 = vmatpush3.bf16.msra.mxu0 (!%p289_p6), %v1327_v1 }
  0x11   : > { %1202 = vmatprep.subr.bf16.mxu0 (!%p289_p6), %v1328_v2  ;;  %1225 = vmatpush3.bf16.msra.mxu1 (!%p289_p6), %v1331_v4 }
  0x12   : > { %s1603_s20 = smov (!%p324_p7, %s1106_s20), 31  ;;  %1226 = vmatprep.subr.bf16.mxu1 %v1332_v9  ;;  %s1146_s25 = sshll.u32 (%p1445_p4), %s1433_s12, 3 }
  0x13   : > { %s1107_s27 = sshll.u32 %s1603_s20, 3 }
  0x14   : > { %s1468_s15 = scalar_lea.vmem %s1588_s0, %s1107_s27  ;;  %1203 = vmatpush3.bf16.msra.mxu0 %v1328_v2  ;;  %s1013_s27 = scalar_lea.vmem (%p1445_p4), %s1597_s9, %s1146_s25 }
  0x15   : > { %v330_v5 = vld [vmem:[%s1468_s15] sm:$0xff]  ;;  %v331_v6 = vld [vmem:[%s1468_s15 + $0x8] sm:$0xff]  ;;  %v332_v10 = vld [vmem:[%s1468_s15 + $0x10] sm:$0xff]  ;;  %1204 = vmatprep.subr.bf16.mxu0 %v1329_v7  ;;  %1227 = vmatpush3.bf16.msra.mxu1 %v1332_v9 }
  0x16   : > { %v346_v8 = vpack.c.bf16 %v331_v6, %v330_v5  ;;  %v333_v11 = vld [vmem:[%s1468_s15 + $0x18] sm:$0xff]  ;;  %v334_v12 = vld [vmem:[%s1468_s15 + $0x20] sm:$0xff]  ;;  %v335_v13 = vld [vmem:[%s1468_s15 + $0x28] sm:$0xff]  ;;  %1228 = vmatprep.subr.bf16.mxu1 %v1333_v14 }
  0x17   : > { %v347_v15 = vpack.c.bf16 %v333_v11, %v332_v10  ;;  %v348_v16 = vpack.c.bf16 %v335_v13, %v334_v12  ;;  %v336_v18 = vld [vmem:[%s1468_s15 + $0x30] sm:$0xff]  ;;  %v337_v19 = vld [vmem:[%s1468_s15 + $0x38] sm:$0xff]  ;;  %v338_v20 = vld [vmem:[%s1468_s15 + $0x40] sm:$0xff] }
  0x18   : > { %1206 = vmatprep.mubr.msk.bf16.mxu0 %vm393_vm0, %v346_v8  ;;  %1205 = vmatpush3.bf16.msra.mxu0 %v1329_v7  ;;  %v339_v21 = vld [vmem:[%s1468_s15 + $0x48] sm:$0xff]  ;;  %v349_v23 = vpack.c.bf16 %v337_v19, %v336_v18  ;;  %v340_v25 = vld [vmem:[%s1468_s15 + $0x50] sm:$0xff]  ;;  %v341_v26 = vld [vmem:[%s1468_s15 + $0x58] sm:$0xff] }
  0x19   : > { %1229 = vmatpush3.bf16.msra.mxu1 %v1333_v14  ;;  %v350_v24 = vpack.c.bf16 %v339_v21, %v338_v20  ;;  %v342_v27 = vld [vmem:[%s1468_s15 + $0x60] sm:$0xff]  ;;  %v343_v28 = vld [vmem:[%s1468_s15 + $0x68] sm:$0xff]  ;;  %v351_v29 = vpack.c.bf16 %v341_v26, %v340_v25  ;;  %v344_v31 = vld [vmem:[%s1468_s15 + $0x70] sm:$0xff]  ;;  %1254 = vmatprep.subr.bf16.mxu0 %v1338_v36 }
  0x1a   : > { %1230 = vmatprep.subr.bf16.mxu1 %v1334_v17  ;;  %v352_v30 = vpack.c.bf16 %v343_v28, %v342_v27  ;;  %v345_v32 = vld [vmem:[%s1468_s15 + $0x78] sm:$0xff] }
  0x1b   : > { %1207 = vmatmul.mubr.msk.bf16.vlgmr.msra.gmra.mrb[0].mxu0 %vm393_vm0, %v347_v15  ;;  %v353_v33 = vpack.c.bf16 %v345_v32, %v344_v31  ;;  %v1341_v32 = vld [vmem:[%s1593_s5 + $0x18] sm:$0xff]  }
  0x1c   : > { %1210 = vmatprep.mubr.msk.bf16.mxu0 %vm393_vm0, %v348_v16  ;;  %1255 = vmatpush3.bf16.msra.mxu0 %v1338_v36 }
  0x1d   : > { %1231 = vmatpush3.bf16.msra.mxu1 %v1334_v17  ;;  %1256 = vmatprep.subr.bf16.mxu0 %v1339_v37 }
  0x1e   : > { %1232 = vmatprep.subr.bf16.mxu1 %v1335_v22 }
  0x20   : > { %1257 = vmatpush3.bf16.msra.mxu0 %v1339_v37 }
  0x21   : > { %1233 = vmatpush3.bf16.msra.mxu1 %v1335_v22  ;;  %1258 = vmatprep.subr.bf16.mxu0 %v1340_v38 }
  0x22   : > { %1234 = vmatprep.subr.bf16.mxu1 %v1336_v34 }
  0x23   : > { %1211 = vmatmul.mubr.msk.bf16.gmra.mrb[4].mxu0 %vm393_vm0, %v349_v23 }
  0x24   : > { %1214 = vmatprep.mubr.msk.bf16.mxu0 %vm393_vm0, %v350_v24  ;;  %1259 = vmatpush3.bf16.msra.mxu0 %v1340_v38 }
  0x25   : > { %1235 = vmatpush3.bf16.msra.mxu1 %v1336_v34  ;;  %1260 = vmatprep.subr.bf16.mxu0 %v1341_v32 }
  0x26   : > { %1236 = vmatprep.subr.bf16.mxu1 %v1337_v35 }
  0x28   : > { %1261 = vmatpush3.bf16.msra.mxu0 %v1341_v32 }
  0x29   : > { %1237 = vmatpush3.bf16.msra.mxu1 %v1337_v35 }
  0x2b   : > { %1215 = vmatmul.mubr.msk.bf16.gmra.mrb[8].mxu0 %vm393_vm0, %v351_v29 }
  0x2c   : > { %1218 = vmatprep.mubr.msk.bf16.mxu0 %vm393_vm0, %v352_v30 }
  0x33   : > { %1219 = vmatmul.mubr.msk.bf16.gmra.mrb[12].mxu0 %vm393_vm0, %v353_v33  ;;  %v1121_v33 = vld [vmem:[%s1592_s4] ss:$0 sm:$0xff] }
  0xee   : > { %v1208_v40 = vpop.f32.mrb[0].mxu0 }
  0xef   : > { %v461_v41 = vadd.f32 %v1208_v40, %v1108_v39  ;;  %v452_v42 = vpop.f32.mrb[1].mxu0 }
  0xf0   : > { %v453_v43 = vadd.f32 %v1108_v39, %v452_v42  ;;  %v1209_v44 = vpop.f32.mrb[2].mxu0 }
  0xf1   : > { %v464_v45 = vadd.f32 %v1209_v44, %v1108_v39  ;;  %v455_v46 = vpop.f32.mrb[3].mxu0  ;;  %v517_v48 = vmax.f32 %v461_v41, 0.0 }
  0xf2   : > { %v456_v47 = vadd.f32 %v1108_v39, %v455_v46  ;;  %v515_v50 = vmax.f32 %v453_v43, 0.0 }
  0xf3   : > { %v518_v49 = vmax.f32 %v464_v45, 0.0 }
  0xf4   : > { %v516_v51 = vmax.f32 %v456_v47, 0.0 }
  0xf5   : > { %v532_v52 = vpack.c.bf16 %v518_v49, %v517_v48 }
  0xf6   : > { %v1212_v53 = vpop.f32.mrb[4].mxu0  ;;  %v531_v54 = vpack.c.bf16 %v516_v51, %v515_v50 }
  0xf7   : > { %v477_v55 = vadd.f32 %v1212_v53, %v1108_v39  ;;  %v468_v56 = vpop.f32.mrb[5].mxu0 }
  0xf8   : > { %v469_v57 = vadd.f32 %v1108_v39, %v468_v56  ;;  %v1213_v58 = vpop.f32.mrb[6].mxu0  ;;  %1238 = vmatprep.mubr.bf16.mxu1 %v531_v54 }
  0xf9   : > { %v521_v59 = vmax.f32 %v477_v55, 0.0  ;;  %v480_v60 = vadd.f32 %v1213_v58, %v1108_v39  ;;  %v471_v61 = vpop.f32.mrb[7].mxu0  ;;  %1239 = vmatmul.mubr.bf16.vlgmr.msra.gmra.mrb[0].mxu1 %v532_v52 }
  0xfa   : > { %v519_v62 = vmax.f32 %v469_v57, 0.0  ;;  %v472_v63 = vadd.f32 %v1108_v39, %v471_v61 }
  0xfb   : > { %v522_v0 = vmax.f32 %v480_v60, 0.0 }
  0xfc   : > { %v520_v1 = vmax.f32 %v472_v63, 0.0 }
  0xfd   : > { %v534_v2 = vpack.c.bf16 %v522_v0, %v521_v59 }
  0xfe   : > { %v533_v3 = vpack.c.bf16 %v520_v1, %v519_v62  ;;  %v1216_v4 = vpop.f32.mrb[8].mxu0 }
  0xff   : > { %v493_v5 = vadd.f32 %v1216_v4, %v1108_v39  ;;  %v484_v6 = vpop.f32.mrb[9].mxu0 }
 0x100   : > { %1242 = vmatprep.mubr.bf16.mxu1 %v533_v3  ;;  %v485_v7 = vadd.f32 %v1108_v39, %v484_v6  ;;  %v1217_v8 = vpop.f32.mrb[10].mxu0 }
 0x101   : > { %1243 = vmatmul.mubr.bf16.gmra.mrb[4].mxu1 %v534_v2  ;;  %v525_v9 = vmax.f32 %v493_v5, 0.0  ;;  %v496_v10 = vadd.f32 %v1217_v8, %v1108_v39  ;;  %v487_v11 = vpop.f32.mrb[11].mxu0 }
 0x102   : > { %v523_v12 = vmax.f32 %v485_v7, 0.0  ;;  %v488_v13 = vadd.f32 %v1108_v39, %v487_v11 }
 0x103   : > { %v526_v14 = vmax.f32 %v496_v10, 0.0 }
 0x104   : > { %v524_v15 = vmax.f32 %v488_v13, 0.0 }
 0x105   : > { %v536_v16 = vpack.c.bf16 %v526_v14, %v525_v9 }
 0x106   : > { %v535_v17 = vpack.c.bf16 %v524_v15, %v523_v12  ;;  %v1220_v18 = vpop.f32.mrb[12].mxu0 }
 0x107   : > { %v509_v19 = vadd.f32 %v1220_v18, %v1108_v39  ;;  %v500_v20 = vpop.f32.mrb[13].mxu0 }
 0x108   : > { %1246 = vmatprep.mubr.bf16.mxu1 %v535_v17  ;;  %v501_v21 = vadd.f32 %v1108_v39, %v500_v20  ;;  %v1221_v22 = vpop.f32.mrb[14].mxu0 }
 0x109   : > { %1247 = vmatmul.mubr.bf16.gmra.mrb[8].mxu1 %v536_v16  ;;  %v529_v23 = vmax.f32 %v509_v19, 0.0  ;;  %v512_v24 = vadd.f32 %v1221_v22, %v1108_v39  ;;  %v503_v25 = vpop.f32.mrb[15].mxu0 }
 0x10a   : > { %v527_v26 = vmax.f32 %v501_v21, 0.0  ;;  %v504_v27 = vadd.f32 %v1108_v39, %v503_v25 }
 0x10b   : > { %v530_v28 = vmax.f32 %v512_v24, 0.0 }
 0x10c   : > { %v528_v29 = vmax.f32 %v504_v27, 0.0  ;;  %v917_v27 = vld [vmem:[%s1596_s8] sm:$0xff] }
 0x10d   : > { %v538_v30 = vpack.c.bf16 %v530_v28, %v529_v23  ;;  %v1369_v28 = vmov 0  }
 0x10e   : > { %v537_v31 = vpack.c.bf16 %v528_v29, %v527_v26  ;;  %v1367_v26 = vmov 0.0   ;;  %1325 = vset.pattern.permute.xlu0 %v1369_v28  ;;  %v918_v29 = vld [vmem:[%s1596_s8 + $0x8] sm:$0xff] }
 0x10f   : > { %1278 = vmatprep.subr.bf16.mxu1 %v1367_v26  ;;  %921 = vperm.xlu0 %1325, %v917_v27  }
 0x110   : > { %1250 = vmatprep.mubr.bf16.mxu1 %v537_v31 }
 0x111   : > { %1251 = vmatmul.mubr.bf16.gmra.mrb[12].mxu1 %v538_v30  ;;  %v1130_v30 = vld [vmem:[%s1594_s6] ss:$0 sm:$0xff] }
 0x112   : > { %1294 = vmatprep.mubr.msk.bf16.mxu1 %vm1368_vm1, %v1367_v26 }
 0x113   : > { %926 = vperm.xlu0 %1325, %v918_v29  }
 0x1cc   : > { %v1240_v34 = vpop.f32.mrb[0].mxu1 }
 0x1cd   : > { %v653_v35 = vadd.f32 %v1240_v34, %v1121_v33  ;;  %v644_v36 = vpop.f32.mrb[1].mxu1 }
 0x1ce   : > { %v645_v37 = vadd.f32 %v1121_v33, %v644_v36  ;;  %v1241_v38 = vpop.f32.mrb[2].mxu1 }
 0x1cf   : > { %v656_v39 = vadd.f32 %v1241_v38, %v1121_v33  ;;  %v647_v40 = vpop.f32.mrb[3].mxu1  ;;  %v709_v42 = vmax.f32 %v653_v35, 0.0 }
 0x1d0   : > { %v648_v41 = vadd.f32 %v1121_v33, %v647_v40  ;;  %v707_v44 = vmax.f32 %v645_v37, 0.0 }
 0x1d1   : > { %v710_v43 = vmax.f32 %v656_v39, 0.0 }
 0x1d2   : > { %v708_v45 = vmax.f32 %v648_v41, 0.0 }
 0x1d3   : > { %v724_v46 = vpack.c.bf16 %v710_v43, %v709_v42 }
 0x1d4   : > { %v723_v47 = vpack.c.bf16 %v708_v45, %v707_v44  ;;  %v1244_v48 = vpop.f32.mrb[4].mxu1 }
 0x1d5   : > { %v669_v49 = vadd.f32 %v1244_v48, %v1121_v33  ;;  %v660_v50 = vpop.f32.mrb[5].mxu1 }
 0x1d6   : > { %v661_v51 = vadd.f32 %v1121_v33, %v660_v50  ;;  %v1245_v52 = vpop.f32.mrb[6].mxu1  ;;  %1262 = vmatprep.mubr.msk.bf16.mxu0 %vm393_vm0, %v723_v47 }
 0x1d7   : > { %v713_v53 = vmax.f32 %v669_v49, 0.0  ;;  %v672_v54 = vadd.f32 %v1245_v52, %v1121_v33  ;;  %v663_v55 = vpop.f32.mrb[7].mxu1  ;;  %1263 = vmatmul.mubr.msk.bf16.vlgmr.msra.gmra.mrb[16].mxu0 %vm393_vm0, %v724_v46 }
 0x1d8   : > { %v711_v56 = vmax.f32 %v661_v51, 0.0  ;;  %v664_v57 = vadd.f32 %v1121_v33, %v663_v55 }
 0x1d9   : > { %v714_v58 = vmax.f32 %v672_v54, 0.0 }
 0x1da   : > { %v712_v59 = vmax.f32 %v664_v57, 0.0 }
 0x1db   : > { %v726_v60 = vpack.c.bf16 %v714_v58, %v713_v53 }
 0x1dc   : > { %v725_v61 = vpack.c.bf16 %v712_v59, %v711_v56  ;;  %v1248_v62 = vpop.f32.mrb[8].mxu1 }
 0x1dd   : > { %v685_v63 = vadd.f32 %v1248_v62, %v1121_v33  ;;  %v676_v0 = vpop.f32.mrb[9].mxu1 }
 0x1de   : > { %1266 = vmatprep.mubr.msk.bf16.mxu0 %vm393_vm0, %v725_v61  ;;  %v677_v1 = vadd.f32 %v1121_v33, %v676_v0  ;;  %v1249_v2 = vpop.f32.mrb[10].mxu1 }
 0x1df   : > { %1267 = vmatmul.mubr.msk.bf16.gmra.mrb[20].mxu0 %vm393_vm0, %v726_v60  ;;  %v717_v3 = vmax.f32 %v685_v63, 0.0  ;;  %v688_v4 = vadd.f32 %v1249_v2, %v1121_v33  ;;  %v679_v5 = vpop.f32.mrb[11].mxu1 }
 0x1e0   : > { %v715_v6 = vmax.f32 %v677_v1, 0.0  ;;  %v680_v7 = vadd.f32 %v1121_v33, %v679_v5 }
 0x1e1   : > { %v718_v8 = vmax.f32 %v688_v4, 0.0 }
 0x1e2   : > { %v716_v9 = vmax.f32 %v680_v7, 0.0 }
 0x1e3   : > { %v728_v10 = vpack.c.bf16 %v718_v8, %v717_v3 }
 0x1e4   : > { %v727_v11 = vpack.c.bf16 %v716_v9, %v715_v6  ;;  %v1252_v12 = vpop.f32.mrb[12].mxu1 }
 0x1e5   : > { %v701_v13 = vadd.f32 %v1252_v12, %v1121_v33  ;;  %v692_v14 = vpop.f32.mrb[13].mxu1 }
 0x1e6   : > { %1270 = vmatprep.mubr.msk.bf16.mxu0 %vm393_vm0, %v727_v11  ;;  %v693_v15 = vadd.f32 %v1121_v33, %v692_v14  ;;  %v1253_v16 = vpop.f32.mrb[14].mxu1 }
 0x1e7   : > { %1271 = vmatmul.mubr.msk.bf16.gmra.mrb[24].mxu0 %vm393_vm0, %v728_v10  ;;  %v721_v17 = vmax.f32 %v701_v13, 0.0  ;;  %v704_v18 = vadd.f32 %v1253_v16, %v1121_v33  ;;  %v695_v19 = vpop.f32.mrb[15].mxu1 }
 0x1e8   : > { %v719_v20 = vmax.f32 %v693_v15, 0.0  ;;  %v696_v21 = vadd.f32 %v1121_v33, %v695_v19 }
 0x1e9   : > { %v722_v22 = vmax.f32 %v704_v18, 0.0 }
 0x1ea   : > { %v720_v23 = vmax.f32 %v696_v21, 0.0 }
 0x1eb   : > { %v730_v24 = vpack.c.bf16 %v722_v22, %v721_v17 }
 0x1ec   : > { %v729_v25 = vpack.c.bf16 %v720_v23, %v719_v20 }
 0x1ee   : > { %1274 = vmatprep.mubr.msk.bf16.mxu0 %vm393_vm0, %v729_v25 }
 0x1ef   : > { %1275 = vmatmul.mubr.msk.bf16.gmra.mrb[28].mxu0 %vm393_vm0, %v730_v24 }
 0x2aa   : > { %v1264_v31 = vpop.f32.mrb[16].mxu0 }
 0x2ab   : > { %v837_v32 = vadd.f32 %v1264_v31, %v1130_v30  ;;  %v828_v33 = vpop.f32.mrb[17].mxu0 }
 0x2ac   : > { %v829_v34 = vadd.f32 %v1130_v30, %v828_v33  ;;  %v1265_v35 = vpop.f32.mrb[18].mxu0  ;;  %v922_v33 = vpop.permute.xlu0 %921 }
 0x2ad   : > { %v840_v36 = vadd.f32 %v1265_v35, %v1130_v30  ;;  %v831_v37 = vpop.f32.mrb[19].mxu0  ;;  %v893_v39 = vmax.f32 %v837_v32, 0.0  ;;  %v1342_v32 = vld [vmem:[%s1595_s7] sm:$0xff]  }
 0x2ae   : > { %v832_v38 = vadd.f32 %v1130_v30, %v831_v37  ;;  %v891_v41 = vmax.f32 %v829_v34, 0.0 }
 0x2af   : > { %v894_v40 = vmax.f32 %v840_v36, 0.0 }
 0x2b0   : > { %v892_v42 = vmax.f32 %v832_v38, 0.0  ;;  %v927_v37 = vpop.permute.xlu0 %926 }
 0x2b1   : > { %v910_v43 = vpack.c.bf16 %v894_v40, %v893_v39 }
 0x2b2   : > { %v909_v44 = vpack.c.bf16 %v892_v42, %v891_v41  ;;  %v1268_v45 = vpop.f32.mrb[20].mxu0 }
 0x2b3   : > { %v853_v46 = vadd.f32 %v1268_v45, %v1130_v30  ;;  %v844_v47 = vpop.f32.mrb[21].mxu0  ;;  %v942_v63 = vsel %vm934_vm2, %v910_v43, 0 }
 0x2b4   : > { %v845_v48 = vadd.f32 %v1130_v30, %v844_v47  ;;  %v1269_v49 = vpop.f32.mrb[22].mxu0  ;;  %v939_v50 = vsel %vm934_vm2, %v909_v44, 0 }
 0x2b5   : > { %v856_v51 = vadd.f32 %v1269_v49, %v1130_v30  ;;  %v847_v52 = vpop.f32.mrb[23].mxu0  ;;  %1279 = vmatpush3.bf16.xpose.msra.mxu1 %v939_v50  ;;  %v897_v54 = vmax.f32 %v853_v46, 0.0 }
 0x2b6   : > { %v848_v53 = vadd.f32 %v1130_v30, %v847_v52  ;;  %1280 = vmatprep.subr.bf16.mxu1 %v1367_v26  ;;  %v895_v56 = vmax.f32 %v845_v48, 0.0 }
 0x2b7   : > { %v898_v55 = vmax.f32 %v856_v51, 0.0 }
 0x2b8   : > { %v896_v57 = vmax.f32 %v848_v53, 0.0 }
 0x2b9   : > { %v912_v58 = vpack.c.bf16 %v898_v55, %v897_v54 }
 0x2ba   : > { %v911_v59 = vpack.c.bf16 %v896_v57, %v895_v56  ;;  %v1272_v60 = vpop.f32.mrb[24].mxu0 }
 0x2bb   : > { %v869_v61 = vadd.f32 %v1272_v60, %v1130_v30  ;;  %v860_v62 = vpop.f32.mrb[25].mxu0  ;;  %v948_v27 = vsel %vm934_vm2, %v912_v58, 0 }
 0x2bc   : > { %v861_v0 = vadd.f32 %v1130_v30, %v860_v62  ;;  %v1273_v1 = vpop.f32.mrb[26].mxu0  ;;  %v945_v14 = vsel %vm934_vm2, %v911_v59, 0 }
 0x2bd   : > { %1281 = vmatpush3.bf16.xpose.msra.mxu1 %v942_v63  ;;  %v901_v2 = vmax.f32 %v869_v61, 0.0  ;;  %v872_v3 = vadd.f32 %v1273_v1, %v1130_v30  ;;  %v863_v4 = vpop.f32.mrb[27].mxu0 }
 0x2be   : > { %v899_v5 = vmax.f32 %v861_v0, 0.0  ;;  %v864_v6 = vadd.f32 %v1130_v30, %v863_v4  ;;  %1282 = vmatprep.subr.bf16.mxu1 %v1367_v26 }
 0x2bf   : > { %v902_v7 = vmax.f32 %v872_v3, 0.0 }
 0x2c0   : > { %v900_v8 = vmax.f32 %v864_v6, 0.0 }
 0x2c1   : > { %v914_v9 = vpack.c.bf16 %v902_v7, %v901_v2 }
 0x2c2   : > { %v913_v10 = vpack.c.bf16 %v900_v8, %v899_v5  ;;  %v1276_v11 = vpop.f32.mrb[28].mxu0 }
 0x2c3   : > { %v885_v12 = vadd.f32 %v1276_v11, %v1130_v30  ;;  %v876_v13 = vpop.f32.mrb[29].mxu0  ;;  %v954_v29 = vsel %vm934_vm2, %v914_v9, 0 }
 0x2c4   : > { %v877_v15 = vadd.f32 %v1130_v30, %v876_v13  ;;  %v1277_v16 = vpop.f32.mrb[30].mxu0  ;;  %v951_v28 = vsel %vm934_vm2, %v913_v10, 0 }
 0x2c5   : > { %1283 = vmatpush3.bf16.xpose.msra.mxu1 %v945_v14  ;;  %v905_v17 = vmax.f32 %v885_v12, 0.0  ;;  %v888_v18 = vadd.f32 %v1277_v16, %v1130_v30  ;;  %v879_v19 = vpop.f32.mrb[31].mxu0 }
 0x2c6   : > { %1284 = vmatprep.subr.bf16.mxu1 %v1367_v26  ;;  %v903_v20 = vmax.f32 %v877_v15, 0.0  ;;  %v880_v21 = vadd.f32 %v1130_v30, %v879_v19 }
 0x2c7   : > { %v906_v22 = vmax.f32 %v888_v18, 0.0 }
 0x2c8   : > { %v904_v23 = vmax.f32 %v880_v21, 0.0 }
 0x2c9   : > { %v916_v24 = vpack.c.bf16 %v906_v22, %v905_v17 }
 0x2ca   : > { %v915_v25 = vpack.c.bf16 %v904_v23, %v903_v20 }
 0x2cb   : > { %v960_v31 = vsel %vm934_vm2, %v916_v24, 0 }
 0x2cc   : > { %v957_v30 = vsel %vm934_vm2, %v915_v25, 0 }
 0x2cd   : > { %1285 = vmatpush3.bf16.xpose.msra.mxu1 %v948_v27 }
 0x2ce   : > { %1286 = vmatprep.subr.bf16.mxu1 %v1367_v26 }
 0x2d5   : > { %1287 = vmatpush3.bf16.xpose.msra.mxu1 %v951_v28 }
 0x2d6   : > { %1288 = vmatprep.subr.bf16.mxu1 %v1367_v26 }
 0x2dd   : > { %1289 = vmatpush3.bf16.xpose.msra.mxu1 %v954_v29 }
 0x2de   : > { %1290 = vmatprep.subr.bf16.mxu1 %v1367_v26 }
 0x2e5   : > { %1291 = vmatpush3.bf16.xpose.msra.mxu1 %v957_v30 }
 0x2e6   : > { %1292 = vmatprep.subr.bf16.mxu1 %v1367_v26 }
 0x2ed   : > { %1293 = vmatpush3.bf16.xpose.msra.mxu1 %v960_v31 }
 0x2f4   : > { %1295 = vmatmul.mubr.msk.bf16.vlgmr.msra.gmra.mrb[16].mxu1 %vm934_vm2, %v1342_v32 }
 0x3c6   : > { %1011 = sbr.rel (!%p1445_p4) target bundleno = 981 (0x3d5), region = 60 }
 0x3c7   : > { %v996_v34 = vpop.f32.mrb[16].mxu1 }
 0x3c8   : > { %v997_v35 = vadd.f32 %v996_v34, %v922_v33  ;;  %v1296_v36 = vpop.f32.mrb[17].mxu1 }
 0x3c9   : > { %v999_v38 = vpop.f32.mrb[18].mxu1 }
 0x3ca   : > { %1003 = vst [vmem:[%s322_s24] sm:$0xff] %v997_v35  ;;  %v1000_v26 = vadd.f32 %v999_v38, %v927_v37  ;;  %v1297_v39 = vpop.f32.mrb[19].mxu1 }
 0x3cc   : > { %1004 = vst [vmem:[%s322_s24 + $0x8] sm:$0xff] %v1000_v26 }
 0x3d1   : > { %v1043_v40 = vld [vmem:[%s322_s24] sm:$0xff] }
 0x3d2   : > { %1044 = vst [vmem:[%s1013_s27] sm:$0xff] %v1043_v40 }
 0x3d3   : > { %v1045_v41 = vld [vmem:[%s322_s24 + $0x8] sm:$0xff] }
 0x3d4   : > { %1046 = vst [vmem:[%s1013_s27 + $0x10] sm:$0xff] %v1045_v41 }
 0x3d5 PF: > { %p16_p8 = scmp.ge.s32.totalorder %s1435_s13, 4   ;;  %s1599_s30 = smov %s1361_s10 }
 0x3d6   : > { %s1600_s10 = smov %s1443_s16  ;;  %s1601_s11 = smov %s1435_s13 }
 0x3d7   :  { %18 = sbr.rel (!%p16_p8) target bundleno = 2 (0x2), region = 124 }

</bundles_post_ra>
